<compile_context>
chip_gen: v7x
topology: tpu7x:2x2x1
jax: 0.10.0
libtpu: 0.0.40
codegen_flags: <defaults>
</compile_context>

<pallas_src>
import functools

import jax
import jax.numpy as jnp
import numpy as np
from jax.experimental import pallas as pl
from jax.experimental.pallas import tpu as pltpu


def _round_up(x, m):
    return (x + m - 1) // m * m


def _sgcn_fused_kernel(x_ref, w_ref, b_ref, o_ref):
    # x_ref: (tb, V*Cin)        input rows (one row per (n, t))
    # w_ref: (V*Cin, Cout*V)    fused conv-weight x adjacency
    # b_ref: (1, Cout*V)        fused bias (f32)
    # o_ref: (tb, Cout*V)
    acc = jnp.dot(x_ref[...], w_ref[...], preferred_element_type=jnp.float32)
    o_ref[...] = (acc + b_ref[...]).astype(o_ref.dtype)


def spatial_graph_conv(x, A, weight, bias, max_graph_distance, *,
                       tb=512, compute_dtype=jnp.bfloat16):
    """x: (N, Cin, T, V) (PyTorch NCHW convention).
       A: (KA, V, V); weight: (K*Cout, Cin) (1x1 conv, squeezed); bias: (K*Cout,).
       Returns (N, Cout, T, V)."""
    k_size = max_graph_distance + 1
    N, Cin, T, V = x.shape
    Cout = weight.shape[0] // k_size

    # ---- wrapper-side fusion of W (1x1 conv) with adjacency A (tiny cost) ----
    w = weight.reshape(k_size, Cout, Cin).astype(jnp.float32)          # W_k[c,i]
    a = A[:k_size].astype(jnp.float32)                                 # A_k[v,w]
    w_fused = jnp.einsum('kci,kvw->vicw', w, a).reshape(V * Cin, Cout * V)
    b_fused = jnp.einsum('kc,kw->cw',
                         bias.reshape(k_size, Cout).astype(jnp.float32),
                         a.sum(axis=1)).reshape(1, Cout * V)

    # ---- lane-dense input layout: (N*T, V*Cin) ----
    NT = N * T
    x_flat = jnp.transpose(x, (0, 2, 3, 1)).reshape(NT, V * Cin)

    # ---- explicit row tile (multiple of 8), pad rows if not divisible ----
    tb = max(8, min(_round_up(tb, 8), _round_up(NT, 8)))
    nt_pad = _round_up(NT, tb)
    if nt_pad != NT:
        x_flat = jnp.pad(x_flat, ((0, nt_pad - NT), (0, 0)))
    grid = (nt_pad // tb,)

    # MXU-friendly compute dtype (f32 accumulation inside the kernel).
    x_flat = x_flat.astype(compute_dtype)
    w_fused = w_fused.astype(compute_dtype)

    out_flat = pl.pallas_call(
        _sgcn_fused_kernel,
        out_shape=jax.ShapeDtypeStruct((nt_pad, Cout * V), x.dtype),
        grid_spec=pltpu.PrefetchScalarGridSpec(
            num_scalar_prefetch=0,
            grid=grid,
            in_specs=[
                pl.BlockSpec((tb, V * Cin), lambda i: (i, 0)),
                pl.BlockSpec((V * Cin, Cout * V), lambda i: (0, 0)),
                pl.BlockSpec((1, Cout * V), lambda i: (0, 0)),
            ],
            out_specs=pl.BlockSpec((tb, Cout * V), lambda i: (i, 0)),
        ),
        compiler_params=pltpu.CompilerParams(
            dimension_semantics=("parallel",),
            vmem_limit_bytes=64 * 1024 * 1024),
    )(x_flat, w_fused, b_fused)

    out_flat = out_flat[:NT]
    # (NT, Cout*V) == row-major (N, T, Cout, V); single cheap layout transform
    # back to the PyTorch NCHW-style (N, Cout, T, V).
    return jnp.transpose(out_flat.reshape(N, T, Cout, V), (0, 2, 1, 3))


def _reference(x, A, weight, bias, max_graph_distance):
    k_size = max_graph_distance + 1
    N, Cin, T, V = x.shape
    Cout = weight.shape[0] // k_size
    y = jnp.einsum('oi,nitv->notv', weight, x) + bias[None, :, None, None]
    y = y.reshape(N, k_size, Cout, T, V)
    return jnp.einsum('nkctv,kvw->nctw', y, A[:k_size])


if __name__ == "__main__":
    # Small shapes consistent with the module's forward.
    N, Cin, Cout, T, V = 2, 4, 8, 8, 16
    max_graph_distance = 2
    K = max_graph_distance + 1

    key = jax.random.PRNGKey(0)
    kx, ka, kw, kb = jax.random.split(key, 4)

    x = jax.random.normal(kx, (N, Cin, T, V), dtype=jnp.float32)
    A = jax.random.normal(ka, (K, V, V), dtype=jnp.float32)
    # nn.Conv2d(Cin, K*Cout, 1) parameters (1x1 kernel squeezed):
    weight = jax.random.normal(kw, (K * Cout, Cin), dtype=jnp.float32) * 0.1
    bias = jax.random.normal(kb, (K * Cout,), dtype=jnp.float32) * 0.1

    ref = _reference(x, A, weight, bias, max_graph_distance)

    # f32 compute path (exact semantics check). tb=8 -> multi-step grid so the
    # BlockSpec pipeline / megacore sharding is actually exercised.
    out_f32 = spatial_graph_conv(x, A, weight, bias, max_graph_distance,
                                 tb=8, compute_dtype=jnp.float32)
    out_f32 = jax.block_until_ready(out_f32)
    assert out_f32.shape == (N, Cout, T, V)
    np.testing.assert_allclose(np.asarray(out_f32), np.asarray(ref),
                               rtol=1e-4, atol=1e-4)

    # Default bf16 compute path (MXU-friendly on v6e/v7x), f32 accumulation.
    out_bf16 = spatial_graph_conv(x, A, weight, bias, max_graph_distance, tb=8)
    out_bf16 = jax.block_until_ready(out_bf16)
    np.testing.assert_allclose(np.asarray(out_bf16), np.asarray(ref),
                               rtol=5e-2, atol=5e-2)

    print("KERNEL_OK")
</pallas_src>

<mosaic_0001>
module attributes {stable_mosaic.version = 11 : i64} {
  func.func @_sgcn_fused_kernel(%arg0: i32, %arg1: memref<8x64xf32, #tpu.memory_space<vmem>>, %arg2: memref<64x128xf32, #tpu.memory_space<vmem>>, %arg3: memref<1x128xf32, #tpu.memory_space<vmem>>, %arg4: memref<8x128xf32, #tpu.memory_space<vmem>>) attributes {dimension_semantics = [#tpu.dimension_semantics<parallel>], iteration_bounds = array<i64: 2>, scalar_prefetch = 0 : i64, scratch_operands = 0 : i64, tpu.core_type = #tpu.core_type<tc>, window_params = [{transform_indices = @transform_0, window_bounds = array<i64: 8, 64>}, {pipeline_mode = #tpu.pipeline_mode<synchronous>, transform_indices = @transform_1, window_bounds = array<i64: 64, 128>}, {pipeline_mode = #tpu.pipeline_mode<synchronous>, transform_indices = @transform_2, window_bounds = array<i64: 1, 128>}, {transform_indices = @transform_3, window_bounds = array<i64: 8, 128>}]} {
    %c0 = arith.constant 0 : index
    %c0_0 = arith.constant 0 : index
    %0 = vector.load %arg1[%c0, %c0_0] : memref<8x64xf32, #tpu.memory_space<vmem>>, vector<8x64xf32>
    %c0_1 = arith.constant 0 : index
    %c0_2 = arith.constant 0 : index
    %1 = vector.load %arg2[%c0_1, %c0_2] : memref<64x128xf32, #tpu.memory_space<vmem>>, vector<64x128xf32>
    %cst = arith.constant dense<0.000000e+00> : vector<8x128xf32>
    %2 = tpu.matmul %0, %1, %cst {dimension_numbers = #tpu.dot_dimension_numbers<[1], [0], [0], [1], [0, 0, 1, 1], [], []>} : vector<8x64xf32>, vector<64x128xf32>, vector<8x128xf32> -> vector<8x128xf32>
    %c0_3 = arith.constant 0 : index
    %c0_4 = arith.constant 0 : index
    %3 = vector.load %arg3[%c0_3, %c0_4] : memref<1x128xf32, #tpu.memory_space<vmem>>, vector<1x128xf32>
    %4 = vector.broadcast %3 : vector<1x128xf32> to vector<8x128xf32>
    %5 = arith.addf %2, %4 : vector<8x128xf32>
    %c0_5 = arith.constant 0 : index
    %c0_6 = arith.constant 0 : index
    %6 = vector.load %arg4[%c0_5, %c0_6] : memref<8x128xf32, #tpu.memory_space<vmem>>, vector<8x128xf32>
    tpu.vector_store %arg4[%c0_5, %c0_6], %5 {strides = array<i32>} : memref<8x128xf32, #tpu.memory_space<vmem>>, vector<8x128xf32>,
    return
  }
  func.func @transform_0(%arg0: i32) -> (i32, i32) {
    %c0_i32 = arith.constant 0 : i32
    %c0_i32_0 = arith.constant 0 : i32
    return %arg0, %c0_i32 : i32, i32
  }
  func.func @transform_1(%arg0: i32) -> (i32, i32) {
    %c0_i32 = arith.constant 0 : i32
    %c0_i32_0 = arith.constant 0 : i32
    %c0_i32_1 = arith.constant 0 : i32
    return %c0_i32, %c0_i32_0 : i32, i32
  }
  func.func @transform_2(%arg0: i32) -> (i32, i32) {
    %c0_i32 = arith.constant 0 : i32
    %c0_i32_0 = arith.constant 0 : i32
    %c0_i32_1 = arith.constant 0 : i32
    return %c0_i32, %c0_i32_0 : i32, i32
  }
  func.func @transform_3(%arg0: i32) -> (i32, i32) {
    %c0_i32 = arith.constant 0 : i32
    %c0_i32_0 = arith.constant 0 : i32
    return %arg0, %c0_i32 : i32, i32
  }
}

</mosaic_0001>

<bundles_post_ra>
// kernel: tpu_custom_call.1
= control target key start
LH: loop header
LB: loop body
LE: loop exit
PB: predicated region body
PF: predicated region fallthrough
CT: control target
= control target key end

     0   :  { %8 = vsyncpa [#allocation3], 0  ;;  %s958_s0 = inlined_call_operand.hbm [shape: f32[16,64], index: 0, kind: input, shape index: {}]   ;;  %s959_s1 = inlined_call_operand.hbm [shape: f32[64,128], index: 1, kind: input, shape index: {}]   ;;  %s960_s2 = inlined_call_operand.hbm [shape: f32[1,128], index: 2, kind: input, shape index: {}]   ;;  %s961_s3 = inlined_call_operand.hbm [shape: f32[16,128], index: 3, kind: output, shape index: {}]  }
   0x1   :  { %10 = vsyncpa [#allocation3 + $0x1], 0 }
   0x2   :  { %11 = vsyncpa [#allocation6], 0 }
   0x3   :  { %12 = vsyncpa [#allocation4], 0 }
   0x4   :  { %14 = vsyncpa [#allocation4 + $0x1], 0  ;;  %s724_s12 = smov 0   ;;  %s726_s13 = smov 0  }
   0x5   :  { %s728_s14 = smov 0   ;;  %s730_s15 = smov 0  }
   0x6 LB: > { %s745_s16 = sadd.s32 4294967295, %s693_s15   ;;  %s407_s17 = sadd.s32 4294967294, %s693_s15   ;;  %s693_s15 = sphi %s730_s15, %s981_s15   ;;  %s689_s14 = sphi %s728_s14, %s980_s14   ;;  %s685_s13 = sphi %s726_s13, %s979_s13   ;;  %s681_s12 = sphi %s724_s12, %s978_s12  }
   0x7   : > { %p40_p0 = scmp.ne.s32.totalorder %s685_s13, %s681_s12  ;;  %p962_p1 = scmp.eq.s32.totalorder %s745_s16, 0 }
   0x8   : > { %p112_p3 = scmp.eq.s32.totalorder %s407_s17, 1  ;;  %p408_p5 = scmp.ge.s32.totalorder %s693_s15, 1 }
   0x9   : > { %p754_p4 = por %p962_p1, %p40_p0  ;;  %p119_p7 = scmp.lt.s32.totalorder %s693_s15, 3 }
   0xa   : > { %p759_p6 = por %p112_p3, %p40_p0  ;;  %s695_s21 = smov [#allocation5]  }
   0xb   : > { %s965_s18 = scalar_select %p754_p4, 1, 0 }
   0xc   : > { %s966_s19 = scalar_select %p759_p6, 1, 0 }
   0xd   : > { %p764_p8 = pnand %p408_p5, %p119_p7  ;;  %s131_s22 = sshll.u32 %s695_s21, 4  ;;  %s768_s22 = int_to_ptr.vmem [resolvable:$true] %s131_s22 }
   0xe   : > { %s696_s24 = smov [#allocation7]   ;;  %s537_s28 = scalar_lea.hbm %s959_s1, 1024 }
   0xf   : > { %p477_p9 = pneg %p764_p8  ;;  %s145_s25 = sshll.u32 %s696_s24, 4  ;;  %s779_s25 = int_to_ptr.vmem [resolvable:$true] %s145_s25 }
  0x10   : > { %p538_p12 = scmp.ne.s32.totalorder %s959_s1, %s537_s28  ;;  %p544_p5 = scmp.lt.u32.totalorder %s537_s28, %s959_s1 }
  0x11   : > { %p775_p11 = pnand %p477_p9, %p962_p1 }
  0x13   : > { %p539_p13 = pneg %p775_p11 }
  0x15   : > { %p540_p0 = pnand %p539_p13, %p538_p12 }
  0x17   : > { %p541_p3 = pneg %p540_p0 }
  0x19   : > { %p546_p7 = pnand %p544_p5, %p541_p3 }
  0x1b   : > { %549 = shalt.err (!%p546_p7)
}
  0x1c   : > { %s550_s6 = scalar_lea.vmem %s768_s22, 1024  ;;  %p558_p2 = scmp.lt.s32.totalorder %s768_s22, %s768_s22 }
  0x1d   : > { %p551_p9 = scmp.ne.s32.totalorder %s768_s22, %s550_s6  ;;  %p559_p12 = scmp.lt.s32.totalorder %s550_s6, %s550_s6 }
  0x1f   : > { %p553_p10 = pnand %p551_p9, %p539_p13  ;;  %p560_p0 = por %p559_p12, %p558_p2 }
  0x21   : > { %p554_p1 = pneg %p553_p10 }
  0x23   : > { %p561_p6 = pnand %p560_p0, %p554_p1 }
  0x25   : > { %564 = shalt.err (!%p561_p6)
}
  0x26   : > { %s697_s7 = smov 128   ;;  %s698_s8 = smov 8  }
  0x27   : > { %480 = dma.hbm_to_vmem [thread:$0]  (!%p775_p11), %s959_s1, 1024, %s768_s22, [#allocation6], %s697_s7, %s697_s7, %s698_s8  }
  0x28   : > { %s565_s21 = scalar_lea.hbm %s960_s2, 16 }
  0x29   : > { %p566_p2 = scmp.ne.s32.totalorder %s960_s2, %s565_s21  ;;  %p572_p10 = scmp.lt.u32.totalorder %s565_s21, %s960_s2 }
  0x2b   : > { %p568_p1 = pnand %p566_p2, %p539_p13 }
  0x2d   : > { %p569_p6 = pneg %p568_p1 }
  0x2f   : > { %p574_p3 = pnand %p572_p10, %p569_p6 }
  0x31   : > { %577 = shalt.err (!%p574_p3)
}
  0x32   : > { %s578_s22 = scalar_lea.vmem %s779_s25, 16  ;;  %s585_s29 = scalar_lea.vmem %s779_s25, 32 }
  0x33   : > { %p579_p5 = scmp.ne.s32.totalorder %s779_s25, %s578_s22  ;;  %p586_p12 = scmp.lt.s32.totalorder %s779_s25, %s779_s25 }
  0x34   : > { %p587_p0 = scmp.lt.s32.totalorder %s585_s29, %s578_s22 }
  0x35   : > { %p581_p7 = pnand %p579_p5, %p539_p13 }
  0x36   : > { %p588_p2 = por %p587_p0, %p586_p12 }
  0x37   : > { %p582_p9 = pneg %p581_p7 }
  0x39   : > { %p589_p1 = pnand %p588_p2, %p582_p9 }
  0x3b   : > { %592 = shalt.err (!%p589_p1)
}
  0x3c   : > { %483 = dma.hbm_to_vmem [thread:$0]  (!%p775_p11), %s960_s2, 16, %s779_s25, [#allocation6]  }
  0x3d   : > { %s835_s5 = sadd.s32 1, %s693_s15   ;;  %s27_s23 = sadd.s32 1, %s689_s14 }
  0x3e   : > { %s24_s6 = ssub.s32 %s693_s15, %s835_s5  ;;  %p34_p13 = scmp.ne.s32.totalorder %s689_s14, %s685_s13 }
  0x3f   : > { %p25_p6 = scmp.eq.s32.totalorder %s24_s6, 0  ;;  %p35_p10 = scmp.eq.s32.totalorder %s693_s15, 0 }
  0x40   : > { %p969_p3 = scmp.eq.s32.totalorder %s745_s16, 1  ;;  %p494_p7 = scmp.lt.s32.totalorder %s693_s15, 2 }
  0x41   : > { %s851_s8 = scalar_select %p25_p6, %s689_s14, %s27_s23  }
  0x42   : > { %p845_p5 = por %p969_p3, %p34_p13  ;;  %p36_p9 = por %p35_p10, %p34_p13 }
  0x43   : > { %s156_s9 = sand.u32 1, %s689_s14   ;;  %s413_s25 = sshll.u32 %s693_s15, 7 }
  0x44   : > { %s970_s7 = scalar_select %p845_p5, 1, 0 }
  0x45   : > { %s412_s10 = sshll.u32 %s156_s9, 3  ;;  %s858_s21 = scalar_lea.hbm %s958_s0, %s413_s25 }
  0x46   : > { %s160_s24 = scalar_lea.vmem [#allocation2], %s412_s10  ;;  %p862_p11 = pnand %p494_p7, %p36_p9 }
  0x47   : > { %s167_s26 = sshll.u32 %s160_s24, 4  ;;  %s157_s28 = scalar_lea.sflag [#allocation3], %s156_s9  ;;  %s860_s26 = int_to_ptr.vmem [resolvable:$true] %s167_s26 }
  0x48   : > { %s593_s22 = scalar_lea.hbm %s858_s21, 128  ;;  %p595_p0 = pneg %p862_p11 }
  0x49   : > { %p594_p12 = scmp.ne.s32.totalorder %s858_s21, %s593_s22  ;;  %s598_s4 = scalar_lea.hbm %s958_s0, 256 }
  0x4a   : > { %p599_p13 = scmp.lt.u32.totalorder %s858_s21, %s958_s0  ;;  %p600_p6 = scmp.lt.u32.totalorder %s598_s4, %s593_s22 }
  0x4b   : > { %p596_p2 = pnand %p595_p0, %p594_p12  ;;  %p602_p3 = scmp.lt.u32.totalorder %s593_s22, %s858_s21 }
  0x4c   : > { %p601_p10 = por %p600_p6, %p599_p13 }
  0x4d   : > { %p597_p1 = pneg %p596_p2 }
  0x4e   : > { %p603_p7 = por %p602_p3, %p601_p10 }
  0x50   : > { %p604_p9 = pnand %p603_p7, %p597_p1 }
  0x52   : > { %607 = shalt.err (!%p604_p9)
}
  0x53   : > { %s608_s9 = scalar_lea.vmem %s860_s26, 128  ;;  %s699_s10 = smov [#allocation2]  }
  0x54   : > { %p609_p12 = scmp.ne.s32.totalorder %s860_s26, %s608_s9  ;;  %s613_s25 = sshll.u32 %s699_s10, 4  ;;  %s614_s25 = int_to_ptr.vmem [resolvable:$false] %s613_s25 }
  0x55   : > { %s615_s11 = scalar_lea.vmem %s614_s25, 256  ;;  %p616_p4 = scmp.lt.s32.totalorder %s860_s26, %s614_s25 }
  0x56   : > { %p611_p2 = pnand %p609_p12, %p595_p0  ;;  %p617_p13 = scmp.lt.s32.totalorder %s615_s11, %s608_s9 }
  0x58   : > { %p612_p5 = pneg %p611_p2  ;;  %p618_p6 = por %p617_p13, %p616_p4 }
  0x5a   : > { %p619_p10 = pnand %p618_p6, %p612_p5 }
  0x5c   : > { %622 = shalt.err (!%p619_p10)
}
  0x5d   : > { %487 = dma.hbm_to_vmem [thread:$0]  (!%p862_p11), %s858_s21, 128, %s860_s26, %s157_s28  }
  0x5e   : > { %176 = sbr.rel (%p764_p8) target bundleno = 351 (0x15f), region = 32  ;;  %s894_s17 = sand.u32 (!%p764_p8), 1, %s685_s13  }
  0x5f   : > { %s415_s24 = sshll.u32 (!%p764_p8), %s894_s17, 3  ;;  %s179_s22 = scalar_lea.sflag (!%p764_p8), [#allocation3], %s894_s17 }
  0x60   : > { %s182_s29 = scalar_lea.vmem (!%p764_p8), [#allocation2], %s415_s24  ;;  %p972_p4 = scmp.ne.s32.totalorder (!%p764_p8), %s965_s18, 0 }
  0x65   : > { %668 = dma.done.wait (%p972_p4), %s179_s22, 128  }
  0x66   : > { %670 = vsyncadd (%p972_p4), %s179_s22, 4294967168  ;;  %p973_p5 = scmp.eq.s32.totalorder %s745_s16, 0 }
  0x68   : > { %672 = dma.done.wait (%p973_p5), [#allocation6], 1040   ;;  %p974_p8 = pmov %p973_p5 }
  0x69   : > { %v700_v0 = vmov 0.0|0.0   ;;  %vm701_vm0 = vmmov 0   ;;  %v702_v1 = vmov 0.0   ;;  %v214_v2 = vld [vmem:[#allocation5] sm:$0xff]  ;;  %v215_v3 = vld [vmem:[#allocation5 + $0x8] sm:$0xff]  ;;  %v216_v4 = vld [vmem:[#allocation5 + $0x10] sm:$0xff] }
  0x6a   : > { %674 = vsyncadd (%p974_p8), [#allocation6], 4294966256  ;;  %453 = vmatprep.subr.bf16.mxu0 %v700_v0  ;;  %450 = vmatprep.mubr.msk.f32.mxu0 %vm701_vm0, %v702_v1  ;;  %v454_v5 = vpack.c.bf16 %v215_v3, %v214_v2  ;;  %v217_v6 = vld [vmem:[#allocation5 + $0x18] sm:$0xff]  ;;  %v218_v8 = vld [vmem:[#allocation5 + $0x20] sm:$0xff]  ;;  %vm229_vm1 = vcmask 523264   ;;  %s422_s18 = sshll.u32 %s745_s16, 7 }
  0x6b   : > { %v457_v7 = vpack.c.bf16 %v217_v6, %v216_v4  ;;  %v219_v9 = vld [vmem:[#allocation5 + $0x28] sm:$0xff]  ;;  %v220_v11 = vld [vmem:[#allocation5 + $0x30] sm:$0xff]  ;;  %v221_v12 = vld [vmem:[#allocation5 + $0x38] sm:$0xff]  ;;  %s212_s20 = scalar_lea.vmem [#allocation8], %s415_s24  ;;  %s914_s28 = scalar_lea.hbm %s961_s3, %s422_s18 }
  0x6c   : > { %455 = vmatpush3.bf16.msra.mxu0 %v454_v5  ;;  %v460_v10 = vpack.c.bf16 %v219_v9, %v218_v8  ;;  %v463_v13 = vpack.c.bf16 %v221_v12, %v220_v11  ;;  %v213_v14 = vld [vmem:[%s182_s29] sm:$0xff]  ;;  %v419_v15 = vld [vmem:[#allocation7] ss:$0 sm:$0xff]  ;;  %s318_s21 = sshll.u32 %s212_s20, 4  ;;  %s305_s30 = scalar_lea.sflag [#allocation4], %s894_s17  ;;  %s916_s21 = int_to_ptr.vmem [resolvable:$true] %s318_s21 }
  0x6d   : > { %456 = vmatprep.subr.bf16.mxu0 %v700_v0  ;;  %s623_s4 = scalar_lea.vmem %s916_s21, 128  ;;  %p975_p0 = scmp.ne.s32.totalorder %s970_s7, 0 }
  0x6e   : > { %p624_p11 = scmp.ne.s32.totalorder %s916_s21, %s623_s4  ;;  %s703_s16 = smov [#allocation8]  }
  0x6f   : > { %s627_s23 = sshll.u32 %s703_s16, 4  ;;  %s628_s23 = int_to_ptr.vmem [resolvable:$false] %s627_s23 }
  0x70   : > { %458 = vmatpush3.bf16.msra.mxu0 %v457_v7  ;;  %p625_p1 = pnand %p624_p11, %p975_p0  ;;  %s629_s6 = scalar_lea.vmem %s628_s23, 256 }
  0x71   : > { %459 = vmatprep.subr.bf16.mxu0 %v700_v0  ;;  %p630_p7 = scmp.lt.s32.totalorder %s916_s21, %s628_s23  ;;  %p631_p9 = scmp.lt.s32.totalorder %s629_s6, %s623_s4 }
  0x72   : > { %p626_p3 = pneg %p625_p1 }
  0x73   : > { %p632_p12 = por %p631_p9, %p630_p7 }
  0x74   : > { %461 = vmatpush3.bf16.msra.mxu0 %v460_v10 }
  0x75   : > { %462 = vmatprep.subr.bf16.mxu0 %v700_v0  ;;  %p633_p2 = pnand %p632_p12, %p626_p3 }
  0x78   : > { %464 = vmatpush3.bf16.msra.mxu0 %v463_v13 }
  0x7b   : > { %451 = vmatmul.mubr.msk.f32.vlgmr.msra.gmra.mrb[0].mxu0 %vm229_vm1, %v213_v14 }
 0x14e   : > { %v299_v16 = vpop.f32.mrb[0].mxu0 }
 0x14f   : > { %v300_v17 = vadd.f32 %v419_v15, %v299_v16  ;;  %v452_v18 = vpop.f32.mrb[1].mxu0 }
 0x151   : > { %303 = vst [vmem:[%s212_s20] sm:$0xff] %v300_v17 }
 0x152   : > { %636 = shalt.err (!%p633_p2)
}
 0x153   : > { %s637_s9 = scalar_lea.hbm %s914_s28, 128  ;;  %s641_s11 = scalar_lea.hbm %s961_s3, 256 }
 0x154   : > { %p638_p13 = scmp.ne.s32.totalorder %s914_s28, %s637_s9  ;;  %p642_p4 = scmp.lt.u32.totalorder %s914_s28, %s961_s3 }
 0x155   : > { %p643_p5 = scmp.lt.u32.totalorder %s641_s11, %s637_s9  ;;  %p645_p11 = scmp.lt.u32.totalorder %s637_s9, %s914_s28 }
 0x156   : > { %p639_p6 = pnand %p638_p13, %p975_p0 }
 0x157   : > { %p644_p8 = por %p643_p5, %p642_p4 }
 0x158   : > { %p640_p10 = pneg %p639_p6 }
 0x159   : > { %p646_p1 = por %p645_p11, %p644_p8 }
 0x15b   : > { %p647_p3 = pnand %p646_p1, %p640_p10 }
 0x15d   : > { %650 = shalt.err (!%p647_p3)
}
 0x15e   : > { %475 = dma.vmem_to_hbm [thread:$0]  (%p975_p0), %s916_s21, 128, %s914_s28, %s305_s30  }
 0x15f PF: > { %s330_s22 = sand.u32 1, %s681_s12   ;;  %p976_p7 = scmp.ne.s32.totalorder %s966_s19, 0 }
 0x160   : > { %p977_p9 = scmp.ge.s32.totalorder %s693_s15, 2  ;;  %s331_s29 = scalar_lea.sflag [#allocation4], %s330_s22 }
 0x162   : > { %p489_p12 = pnand %p977_p9, %p976_p7 }
 0x164   : > { %676 = dma.done.wait (!%p489_p12), %s331_s29, 128  }
 0x165   : > { %678 = vsyncadd (!%p489_p12), %s331_s29, 4294967168  ;;  %p17_p2 = scmp.ge.s32.totalorder %s835_s5, 4   ;;  %s978_s12 = smov %s685_s13 }
 0x166   : > { %s979_s13 = smov %s689_s14  ;;  %s980_s14 = smov %s851_s8 }
 0x167   : > { %s981_s15 = smov %s835_s5  ;;  %19 = sbr.rel (!%p17_p2) target bundleno = 6 (0x6), region = 85 }
 0x16e   :  { %336 = vsyncpa [#allocation3], 1 }
 0x16f   :  { %338 = vsyncpa [#allocation3 + $0x1], 1 }
 0x170   :  { %339 = vsyncpa [#allocation6], 1 }
 0x171   :  { %340 = vsyncpa [#allocation4], 1 }
 0x172   :  { %342 = vsyncpa [#allocation4 + $0x1], 1 }

</bundles_post_ra>
